<compile_context>
chip_gen: v7x
topology: tpu7x:2x2x1
jax: 0.10.0
libtpu: 0.0.40
codegen_flags: <defaults>
</compile_context>

<pallas_src>
import functools
import math

import numpy as np
import jax
import jax.numpy as jnp
from jax.experimental import pallas as pl
from jax.experimental.pallas import tpu as pltpu


# -----------------------------------------------------------------------------
# Pallas kernel
# -----------------------------------------------------------------------------
def unit_tcn_kernel(xpad_ref, w_ref, shift_ref, o_ref, *, V, compute_dtype):
    """One (sample, Cout-block) step of conv(9,1) + folded BN.

    xpad_ref : (1, Cin, (T+2p)*V)  zero-padded input, time*joints on the lane axis
    w_ref    : (K, BC, Cin)        conv taps with BN scale folded in
    shift_ref: (BC, 1)             conv bias + BN shift, folded
    o_ref    : (1, BC, T*V)
    """
    BC, TV = o_ref.shape[1], o_ref.shape[2]
    K = w_ref.shape[0]

    w = w_ref[...].astype(compute_dtype)                     # (K, BC, Cin), small

    acc = jnp.zeros((BC, TV), jnp.float32)
    for k in range(K):                                        # K = 9, static unroll
        # time-shifted lane slice of the padded input: columns [k*V, k*V + T*V)
        xs = xpad_ref[0, :, pl.ds(k * V, TV)].astype(compute_dtype)   # (Cin, T*V)
        acc = acc + jnp.dot(w[k], xs, preferred_element_type=jnp.float32)

    # folded BN shift + single lane-dense slab store
    o_ref[0] = (acc + shift_ref[...]).astype(o_ref.dtype)


# -----------------------------------------------------------------------------
# Wrapper: BN folding, padding, pallas_call
# -----------------------------------------------------------------------------
def run_unit_tcn(x, P, keep_prob=1.0, A=None, compute_dtype=jnp.float32):
    """x: (N, Cin, T, V) float32 (PyTorch NCHW). Returns (N, Cout, T, V)."""
    del keep_prob, A  # DropBlock_Ske / DropBlockT_1d are identities at inference.
    N, Cin, T, V = x.shape
    Cout, _, K, _ = P['conv_w'].shape
    pad = (K - 1) // 2
    eps = 1e-5

    # ---- fold eval-mode BatchNorm (+ conv bias) into per-channel scale / shift ----
    s = P['bn_g'] / jnp.sqrt(P['bn_v'] + eps)                        # (Cout,)
    w_f = (jnp.transpose(P['conv_w'][:, :, :, 0], (2, 0, 1))         # (K, Cout, Cin)
           * s[None, :, None]).astype(compute_dtype)
    shift = (((P['conv_b'] - P['bn_m']) * s + P['bn_b'])[:, None]    # (Cout, 1)
             .astype(jnp.float32))

    # ---- zero-pad time and flatten (T, V) onto the lane axis (contiguous reshape) ----
    TV = T * V
    Tp = T + 2 * pad
    xpad = jnp.pad(x, ((0, 0), (0, 0), (pad, pad), (0, 0))).reshape(N, Cin, Tp * V)

    # Cout blocking: full Cout for small layers; 256-channel blocks for big layers
    # (second "parallel" grid axis -> both v7x TensorCores get work even at N == 1).
    bc = Cout if (Cout <= 256 or Cout % 256 != 0) else 256
    grid = (N, Cout // bc)

    kernel = functools.partial(unit_tcn_kernel, V=V, compute_dtype=compute_dtype)
    out_flat = pl.pallas_call(
        kernel,
        out_shape=jax.ShapeDtypeStruct((N, Cout, TV), jnp.float32),
        grid_spec=pltpu.PrefetchScalarGridSpec(
            num_scalar_prefetch=0,
            grid=grid,
            in_specs=[
                pl.BlockSpec((1, Cin, Tp * V), lambda n, co: (n, 0, 0)),   # padded x
                pl.BlockSpec((K, bc, Cin), lambda n, co: (0, co, 0)),      # folded taps
                pl.BlockSpec((bc, 1), lambda n, co: (co, 0)),              # folded shift
            ],
            out_specs=pl.BlockSpec((1, bc, TV), lambda n, co: (n, co, 0)),
        ),
        compiler_params=pltpu.CompilerParams(
            dimension_semantics=("parallel", "parallel")),
    )(xpad, w_f, shift)

    return out_flat.reshape(N, Cout, T, V)


# -----------------------------------------------------------------------------
# Deterministic parameter init (shapes follow the PyTorch module __init__)
# -----------------------------------------------------------------------------
def init_params(key, Cin, Cout, K=9):
    ks = jax.random.split(key, 6)
    P = {}
    # conv: kaiming_normal_(fan_out) -> std = sqrt(2 / (Cout * K * 1)); bias init is 0
    # in the module, but we use a small non-zero bias to exercise the folding path.
    P['conv_w'] = jax.random.normal(ks[0], (Cout, Cin, K, 1), jnp.float32) * \
        math.sqrt(2.0 / (Cout * K))
    P['conv_b'] = 0.1 * jax.random.normal(ks[1], (Cout,), jnp.float32)
    # eval-mode BN with non-trivial running stats so the folding is actually tested.
    P['bn_g'] = 1.0 + 0.1 * jax.random.normal(ks[2], (Cout,), jnp.float32)
    P['bn_b'] = 0.1 * jax.random.normal(ks[3], (Cout,), jnp.float32)
    P['bn_m'] = 0.1 * jax.random.normal(ks[4], (Cout,), jnp.float32)
    P['bn_v'] = jnp.abs(1.0 + 0.1 * jax.random.normal(ks[5], (Cout,), jnp.float32))
    return P


# -----------------------------------------------------------------------------
# Pure-JAX reference (mirrors the PyTorch eval-mode forward)
# -----------------------------------------------------------------------------
def reference_forward(x, P):
    eps = 1e-5
    K = P['conv_w'].shape[2]
    pad = (K - 1) // 2
    y = jax.lax.conv_general_dilated(
        x, P['conv_w'], window_strides=(1, 1),
        padding=[(pad, pad), (0, 0)],
        dimension_numbers=('NCHW', 'OIHW', 'NCHW'),
        precision=jax.lax.Precision.HIGHEST) + P['conv_b'][None, :, None, None]
    y = (y - P['bn_m'][None, :, None, None]) / \
        jnp.sqrt(P['bn_v'][None, :, None, None] + eps) * \
        P['bn_g'][None, :, None, None] + P['bn_b'][None, :, None, None]
    # DropBlock_Ske / DropBlockT_1d are identities at inference; no ReLU in forward.
    return y


# -----------------------------------------------------------------------------
if __name__ == "__main__":
    N, Cin, Cout, T, V = 2, 4, 8, 16, 16
    key = jax.random.PRNGKey(0)
    kx, kp, ka = jax.random.split(key, 3)
    x = jax.random.normal(kx, (N, Cin, T, V), jnp.float32)
    P = init_params(kp, Cin, Cout)
    A = jax.random.uniform(ka, (3, V, V), jnp.float32)   # only used by DropBlock (identity here)

    out = jax.block_until_ready(run_unit_tcn(x, P, keep_prob=0.9, A=A))
    ref = jax.block_until_ready(reference_forward(x, P))

    np.testing.assert_allclose(np.asarray(out), np.asarray(ref), rtol=2e-3, atol=2e-3)
    print("KERNEL_OK")
</pallas_src>

<mosaic_0001>
module attributes {stable_mosaic.version = 11 : i64} {
  func.func @unit_tcn_kernel(%arg0: i32, %arg1: i32, %arg2: memref<1x4x384xf32, #tpu.memory_space<vmem>>, %arg3: memref<9x8x4xf32, #tpu.memory_space<vmem>>, %arg4: memref<8x1xf32, #tpu.memory_space<vmem>>, %arg5: memref<1x8x256xf32, #tpu.memory_space<vmem>>) attributes {dimension_semantics = [#tpu.dimension_semantics<parallel>, #tpu.dimension_semantics<parallel>], iteration_bounds = array<i64: 2, 1>, scalar_prefetch = 0 : i64, scratch_operands = 0 : i64, tpu.core_type = #tpu.core_type<tc>, window_params = [{transform_indices = @transform_0, window_bounds = array<i64: 1, 4, 384>}, {transform_indices = @transform_1, window_bounds = array<i64: 9, 8, 4>}, {transform_indices = @transform_2, window_bounds = array<i64: 8, 1>}, {transform_indices = @transform_3, window_bounds = array<i64: 1, 8, 256>}]} {
    %c0 = arith.constant 0 : index
    %c0_0 = arith.constant 0 : index
    %c0_1 = arith.constant 0 : index
    %0 = vector.load %arg3[%c0, %c0_0, %c0_1] : memref<9x8x4xf32, #tpu.memory_space<vmem>>, vector<9x8x4xf32>
    %cst = arith.constant 0.000000e+00 : f32
    %1 = vector.broadcast %cst : f32 to vector<8x256xf32>
    %c0_2 = arith.constant 0 : index
    %c0_3 = arith.constant 0 : index
    %c0_4 = arith.constant 0 : index
    %2 = vector.load %arg2[%c0_2, %c0_3, %c0_4] : memref<1x4x384xf32, #tpu.memory_space<vmem>>, vector<1x4x256xf32>
    %3 = vector.shape_cast %2 : vector<1x4x256xf32> to vector<4x256xf32>
    %4 = vector.extract_strided_slice %0 {offsets = [0, 0, 0], sizes = [1, 8, 4], strides = [1, 1, 1]} : vector<9x8x4xf32> to vector<1x8x4xf32>
    %5 = vector.shape_cast %4 : vector<1x8x4xf32> to vector<8x4xf32>
    %cst_5 = arith.constant dense<0.000000e+00> : vector<8x256xf32>
    %6 = tpu.matmul %5, %3, %cst_5 {dimension_numbers = #tpu.dot_dimension_numbers<[1], [0], [0], [1], [0, 0, 1, 1], [], []>} : vector<8x4xf32>, vector<4x256xf32>, vector<8x256xf32> -> vector<8x256xf32>
    %7 = arith.addf %1, %6 : vector<8x256xf32>
    %c0_6 = arith.constant 0 : index
    %c0_7 = arith.constant 0 : index
    %c16 = arith.constant 16 : index
    %8 = vector.load %arg2[%c0_6, %c0_7, %c16] : memref<1x4x384xf32, #tpu.memory_space<vmem>>, vector<1x4x256xf32>
    %9 = vector.shape_cast %8 : vector<1x4x256xf32> to vector<4x256xf32>
    %10 = vector.extract_strided_slice %0 {offsets = [1, 0, 0], sizes = [1, 8, 4], strides = [1, 1, 1]} : vector<9x8x4xf32> to vector<1x8x4xf32>
    %11 = vector.shape_cast %10 : vector<1x8x4xf32> to vector<8x4xf32>
    %cst_8 = arith.constant dense<0.000000e+00> : vector<8x256xf32>
    %12 = tpu.matmul %11, %9, %cst_8 {dimension_numbers = #tpu.dot_dimension_numbers<[1], [0], [0], [1], [0, 0, 1, 1], [], []>} : vector<8x4xf32>, vector<4x256xf32>, vector<8x256xf32> -> vector<8x256xf32>
    %13 = arith.addf %7, %12 : vector<8x256xf32>
    %c0_9 = arith.constant 0 : index
    %c0_10 = arith.constant 0 : index
    %c32 = arith.constant 32 : index
    %14 = vector.load %arg2[%c0_9, %c0_10, %c32] : memref<1x4x384xf32, #tpu.memory_space<vmem>>, vector<1x4x256xf32>
    %15 = vector.shape_cast %14 : vector<1x4x256xf32> to vector<4x256xf32>
    %16 = vector.extract_strided_slice %0 {offsets = [2, 0, 0], sizes = [1, 8, 4], strides = [1, 1, 1]} : vector<9x8x4xf32> to vector<1x8x4xf32>
    %17 = vector.shape_cast %16 : vector<1x8x4xf32> to vector<8x4xf32>
    %cst_11 = arith.constant dense<0.000000e+00> : vector<8x256xf32>
    %18 = tpu.matmul %17, %15, %cst_11 {dimension_numbers = #tpu.dot_dimension_numbers<[1], [0], [0], [1], [0, 0, 1, 1], [], []>} : vector<8x4xf32>, vector<4x256xf32>, vector<8x256xf32> -> vector<8x256xf32>
    %19 = arith.addf %13, %18 : vector<8x256xf32>
    %c0_12 = arith.constant 0 : index
    %c0_13 = arith.constant 0 : index
    %c48 = arith.constant 48 : index
    %20 = vector.load %arg2[%c0_12, %c0_13, %c48] : memref<1x4x384xf32, #tpu.memory_space<vmem>>, vector<1x4x256xf32>
    %21 = vector.shape_cast %20 : vector<1x4x256xf32> to vector<4x256xf32>
    %22 = vector.extract_strided_slice %0 {offsets = [3, 0, 0], sizes = [1, 8, 4], strides = [1, 1, 1]} : vector<9x8x4xf32> to vector<1x8x4xf32>
    %23 = vector.shape_cast %22 : vector<1x8x4xf32> to vector<8x4xf32>
    %cst_14 = arith.constant dense<0.000000e+00> : vector<8x256xf32>
    %24 = tpu.matmul %23, %21, %cst_14 {dimension_numbers = #tpu.dot_dimension_numbers<[1], [0], [0], [1], [0, 0, 1, 1], [], []>} : vector<8x4xf32>, vector<4x256xf32>, vector<8x256xf32> -> vector<8x256xf32>
    %25 = arith.addf %19, %24 : vector<8x256xf32>
    %c0_15 = arith.constant 0 : index
    %c0_16 = arith.constant 0 : index
    %c64 = arith.constant 64 : index
    %26 = vector.load %arg2[%c0_15, %c0_16, %c64] : memref<1x4x384xf32, #tpu.memory_space<vmem>>, vector<1x4x256xf32>
    %27 = vector.shape_cast %26 : vector<1x4x256xf32> to vector<4x256xf32>
    %28 = vector.extract_strided_slice %0 {offsets = [4, 0, 0], sizes = [1, 8, 4], strides = [1, 1, 1]} : vector<9x8x4xf32> to vector<1x8x4xf32>
    %29 = vector.shape_cast %28 : vector<1x8x4xf32> to vector<8x4xf32>
    %cst_17 = arith.constant dense<0.000000e+00> : vector<8x256xf32>
    %30 = tpu.matmul %29, %27, %cst_17 {dimension_numbers = #tpu.dot_dimension_numbers<[1], [0], [0], [1], [0, 0, 1, 1], [], []>} : vector<8x4xf32>, vector<4x256xf32>, vector<8x256xf32> -> vector<8x256xf32>
    %31 = arith.addf %25, %30 : vector<8x256xf32>
    %c0_18 = arith.constant 0 : index
    %c0_19 = arith.constant 0 : index
    %c80 = arith.constant 80 : index
    %32 = vector.load %arg2[%c0_18, %c0_19, %c80] : memref<1x4x384xf32, #tpu.memory_space<vmem>>, vector<1x4x256xf32>
    %33 = vector.shape_cast %32 : vector<1x4x256xf32> to vector<4x256xf32>
    %34 = vector.extract_strided_slice %0 {offsets = [5, 0, 0], sizes = [1, 8, 4], strides = [1, 1, 1]} : vector<9x8x4xf32> to vector<1x8x4xf32>
    %35 = vector.shape_cast %34 : vector<1x8x4xf32> to vector<8x4xf32>
    %cst_20 = arith.constant dense<0.000000e+00> : vector<8x256xf32>
    %36 = tpu.matmul %35, %33, %cst_20 {dimension_numbers = #tpu.dot_dimension_numbers<[1], [0], [0], [1], [0, 0, 1, 1], [], []>} : vector<8x4xf32>, vector<4x256xf32>, vector<8x256xf32> -> vector<8x256xf32>
    %37 = arith.addf %31, %36 : vector<8x256xf32>
    %c0_21 = arith.constant 0 : index
    %c0_22 = arith.constant 0 : index
    %c96 = arith.constant 96 : index
    %38 = vector.load %arg2[%c0_21, %c0_22, %c96] : memref<1x4x384xf32, #tpu.memory_space<vmem>>, vector<1x4x256xf32>
    %39 = vector.shape_cast %38 : vector<1x4x256xf32> to vector<4x256xf32>
    %40 = vector.extract_strided_slice %0 {offsets = [6, 0, 0], sizes = [1, 8, 4], strides = [1, 1, 1]} : vector<9x8x4xf32> to vector<1x8x4xf32>
    %41 = vector.shape_cast %40 : vector<1x8x4xf32> to vector<8x4xf32>
    %cst_23 = arith.constant dense<0.000000e+00> : vector<8x256xf32>
    %42 = tpu.matmul %41, %39, %cst_23 {dimension_numbers = #tpu.dot_dimension_numbers<[1], [0], [0], [1], [0, 0, 1, 1], [], []>} : vector<8x4xf32>, vector<4x256xf32>, vector<8x256xf32> -> vector<8x256xf32>
    %43 = arith.addf %37, %42 : vector<8x256xf32>
    %c0_24 = arith.constant 0 : index
    %c0_25 = arith.constant 0 : index
    %c112 = arith.constant 112 : index
    %44 = vector.load %arg2[%c0_24, %c0_25, %c112] : memref<1x4x384xf32, #tpu.memory_space<vmem>>, vector<1x4x256xf32>
    %45 = vector.shape_cast %44 : vector<1x4x256xf32> to vector<4x256xf32>
    %46 = vector.extract_strided_slice %0 {offsets = [7, 0, 0], sizes = [1, 8, 4], strides = [1, 1, 1]} : vector<9x8x4xf32> to vector<1x8x4xf32>
    %47 = vector.shape_cast %46 : vector<1x8x4xf32> to vector<8x4xf32>
    %cst_26 = arith.constant dense<0.000000e+00> : vector<8x256xf32>
    %48 = tpu.matmul %47, %45, %cst_26 {dimension_numbers = #tpu.dot_dimension_numbers<[1], [0], [0], [1], [0, 0, 1, 1], [], []>} : vector<8x4xf32>, vector<4x256xf32>, vector<8x256xf32> -> vector<8x256xf32>
    %49 = arith.addf %43, %48 : vector<8x256xf32>
    %c0_27 = arith.constant 0 : index
    %c0_28 = arith.constant 0 : index
    %c128 = arith.constant 128 : index
    %50 = vector.load %arg2[%c0_27, %c0_28, %c128] : memref<1x4x384xf32, #tpu.memory_space<vmem>>, vector<1x4x256xf32>
    %51 = vector.shape_cast %50 : vector<1x4x256xf32> to vector<4x256xf32>
    %52 = vector.extract_strided_slice %0 {offsets = [8, 0, 0], sizes = [1, 8, 4], strides = [1, 1, 1]} : vector<9x8x4xf32> to vector<1x8x4xf32>
    %53 = vector.shape_cast %52 : vector<1x8x4xf32> to vector<8x4xf32>
    %cst_29 = arith.constant dense<0.000000e+00> : vector<8x256xf32>
    %54 = tpu.matmul %53, %51, %cst_29 {dimension_numbers = #tpu.dot_dimension_numbers<[1], [0], [0], [1], [0, 0, 1, 1], [], []>} : vector<8x4xf32>, vector<4x256xf32>, vector<8x256xf32> -> vector<8x256xf32>
    %55 = arith.addf %49, %54 : vector<8x256xf32>
    %c0_30 = arith.constant 0 : index
    %c0_31 = arith.constant 0 : index
    %56 = vector.load %arg4[%c0_30, %c0_31] : memref<8x1xf32, #tpu.memory_space<vmem>>, vector<8x1xf32>
    %57 = vector.broadcast %56 : vector<8x1xf32> to vector<8x256xf32>
    %58 = arith.addf %55, %57 : vector<8x256xf32>
    %c0_32 = arith.constant 0 : index
    %c0_33 = arith.constant 0 : index
    %c0_34 = arith.constant 0 : index
    %59 = vector.load %arg5[%c0_32, %c0_33, %c0_34] : memref<1x8x256xf32, #tpu.memory_space<vmem>>, vector<1x8x256xf32>
    %60 = vector.shape_cast %59 : vector<1x8x256xf32> to vector<8x256xf32>
    %61 = vector.shape_cast %58 : vector<8x256xf32> to vector<1x8x256xf32>
    tpu.vector_store %arg5[%c0_32, %c0_33, %c0_34], %61 {strides = array<i32>} : memref<1x8x256xf32, #tpu.memory_space<vmem>>, vector<1x8x256xf32>,
    return
  }
  func.func @transform_0(%arg0: i32, %arg1: i32) -> (i32, i32, i32) {
    %c0_i32 = arith.constant 0 : i32
    %c0_i32_0 = arith.constant 0 : i32
    %c0_i32_1 = arith.constant 0 : i32
    return %arg0, %c0_i32, %c0_i32_0 : i32, i32, i32
  }
  func.func @transform_1(%arg0: i32, %arg1: i32) -> (i32, i32, i32) {
    %c0_i32 = arith.constant 0 : i32
    %c0_i32_0 = arith.constant 0 : i32
    %c0_i32_1 = arith.constant 0 : i32
    return %c0_i32, %arg1, %c0_i32_0 : i32, i32, i32
  }
  func.func @transform_2(%arg0: i32, %arg1: i32) -> (i32, i32) {
    %c0_i32 = arith.constant 0 : i32
    %c0_i32_0 = arith.constant 0 : i32
    return %arg1, %c0_i32 : i32, i32
  }
  func.func @transform_3(%arg0: i32, %arg1: i32) -> (i32, i32, i32) {
    %c0_i32 = arith.constant 0 : i32
    %c0_i32_0 = arith.constant 0 : i32
    return %arg0, %arg1, %c0_i32 : i32, i32, i32
  }
}

</mosaic_0001>

<bundles_post_ra>
// kernel: tpu_custom_call.1
= control target key start
LH: loop header
LB: loop body
LE: loop exit
PB: predicated region body
PF: predicated region fallthrough
CT: control target
= control target key end

     0   :  { %8 = vsyncpa [#allocation3], 0  ;;  %s1625_s0 = inlined_call_operand.vmem [shape: f32[2,4,384], index: 0, kind: input, shape index: {}]   ;;  %s1626_s1 = inlined_call_operand.vmem [shape: f32[9,8,4], index: 1, kind: input, shape index: {}]   ;;  %s1627_s2 = inlined_call_operand.vmem [shape: f32[8,1], index: 2, kind: input, shape index: {}]   ;;  %s1628_s3 = inlined_call_operand.hbm [shape: f32[2,8,256], index: 3, kind: output, shape index: {}]  }
   0x1   :  { %10 = vsyncpa [#allocation3 + $0x1], 0  ;;  %s1412_s12 = smov 0   ;;  %s1414_s13 = smov 0  }
   0x2   :  { %s1416_s14 = smov 0   ;;  %s1418_s15 = smov 0  }
   0x3   :  { %s1420_s16 = smov 0   ;;  %s1422_s17 = smov 0  }
   0x4 LB: > { %s1175_s18 = sadd.s32 4294967295, %s1380_s17   ;;  %s1176_s19 = sadd.s32 4294967294, %s1380_s17   ;;  %s1380_s17 = sphi %s1422_s17, %s16_s17   ;;  %s1376_s16 = sphi %s1420_s16, %s1635_s16   ;;  %s1372_s15 = sphi %s1418_s15, %s1634_s15   ;;  %s1368_s14 = sphi %s1416_s14, %s1633_s14   ;;  %s1364_s13 = sphi %s1414_s13, %s1632_s13   ;;  %s1360_s12 = sphi %s1412_s12, %s1631_s12  }
   0x5   : > { %s28_s20 = sadd.s32 1, %s1376_s16  ;;  %s115_s21 = sadd.s32 1, %s1368_s14 }
   0x6   : > { %p30_p0 = scmp.ge.s32.totalorder %s28_s20, 2  ;;  %p125_p1 = scmp.ne.s32.totalorder %s1368_s14, %s1364_s13 }
   0x7   : > { %p126_p2 = scmp.eq.s32.totalorder %s1175_s18, 1  ;;  %p131_p3 = scmp.ne.s32.totalorder %s1364_s13, %s1360_s12 }
   0x8   : > { %s1637_s20 = smov (%p30_p0, %s28_s20), 0  ;;  %p132_p5 = scmp.eq.s32.totalorder %s1176_s19, 1 }
   0x9   : > { %p1452_p4 = por %p126_p2, %p125_p1  ;;  %s110_s23 = ssub.s32 %s1376_s16, %s1637_s20 }
   0xa   : > { %p1181_p6 = scmp.ge.s32.totalorder %s1380_s17, 1  ;;  %p113_p7 = scmp.eq.s32.totalorder %s110_s23, 0 }
   0xb   : > { %p1459_p8 = por %p132_p5, %p131_p3  ;;  %p172_p9 = scmp.lt.s32.totalorder %s1380_s17, 3 }
   0xc   : > { %s1465_s25 = scalar_select %p113_p7, %s1368_s14, %s115_s21  }
   0xd   : > { %p173_p10 = pnand %p1181_p6, %p172_p9 }
   0xe   : > { %p204_p11 = scmp.lt.s32.totalorder (!%p173_p10), %s1372_s15, 1  ;;  %v1382_v0 = vmov (!%p173_p10), 0.0   ;;  %s1383_s4 = smov (!%p173_p10), 64   ;;  %v1389_v9 = vmov (!%p173_p10), 0   ;;  %v1048_v11 = vld [vmem:[%s1627_s2] sm:$0xff] (!%p173_p10)  ;;  %vm600_vm0 = vcmask (!%p173_p10), 523264  }
   0xf   : > { %176 = sbr.rel (%p173_p10) target bundleno = 416 (0x1a0), region = 32  ;;  %674 = vmatprep.mubr.f32.mxu0 (!%p173_p10), %v1382_v0  ;;  %314 = vmatprep.mubr.f32.mxu1 (!%p173_p10), %v1382_v0  ;;  %s1384_s5 = smov (!%p173_p10), 112   ;;  %vm245_vm1 = vcmask (!%p173_p10), 1043456   ;;  %v221_v18 = vld [vmem:[%s1626_s1 + $0x20] sm:$0xff] (!%p173_p10)  ;;  %vm241_vm2 = vcmask (!%p173_p10), 31744   ;;  %vm238_vm3 = vcmask (!%p173_p10), 916480  }
  0x10   : > { %s1385_s6 = smov (!%p173_p10), 48   ;;  %s1386_s7 = smov (!%p173_p10), 32   ;;  %1298 = vset.pattern.permute.xlu1 (!%p173_p10), %v1389_v9  ;;  %1299 = vset.pattern.permute.xlu0 (!%p173_p10), %v1389_v9  ;;  %vm694_vm4 = vcmask (!%p173_p10), 392192   ;;  %v218_v24 = vld [vmem:[%s1626_s1 + $0x8] sm:$0xff] (!%p173_p10)  ;;  %vm788_vm5 = vcmask (!%p173_p10), 261120   ;;  %v217_v33 = vld [vmem:[%s1626_s1] sm:$0xff] (!%p173_p10) }
  0x11   : > { %s1387_s8 = smov (!%p173_p10), 96   ;;  %s1388_s9 = smov (!%p173_p10), 16   ;;  %v222_v29 = vld [vmem:[%s1626_s1 + $0x28] sm:$0xff] (!%p173_p10)  ;;  %vm412_vm6 = vcmask (!%p173_p10), 785408   ;;  %v223_v38 = vld [vmem:[%s1626_s1 + $0x30] sm:$0xff] (!%p173_p10)  ;;  %vm882_vm7 = vcmask (!%p173_p10), 130048  }
  0x12   : > { %s1390_s10 = smov (!%p173_p10), 80   ;;  %v219_v46 = vld [vmem:[%s1626_s1 + $0x10] sm:$0xff] (!%p173_p10)  ;;  %v224_v47 = vld [vmem:[%s1626_s1 + $0x38] sm:$0xff] (!%p173_p10)  ;;  %vm506_vm8 = vcmask (!%p173_p10), 654336   ;;  %v225_v56 = vld [vmem:[%s1626_s1 + $0x40] sm:$0xff] (!%p173_p10)  ;;  %s201_s21 = sand.u32 (!%p173_p10), 1, %s1364_s13  }
  0x13   : > { %v220_v55 = vld [vmem:[%s1626_s1 + $0x18] sm:$0xff] (!%p173_p10)  ;;  %s1182_s23 = sshll.u32 (!%p173_p10), %s201_s21, 4 }
  0x16   : > { %s205_s26 = scalar_select %p204_p11, %s1372_s15, 1 }
  0x18   : > { %s1233_s27 = smul.u32 12, %s205_s26  ;;  %s1216_s26 = sshll.u32 %s1372_s15, 8 }
  0x19   : > { %s1391_s15 = smov [#allocation2]  }
  0x1a   : > { %s1474_s30 = scalar_lea.vmem %s1625_s0, %s1233_s27  ;;  %s203_s27 = scalar_lea.vmem [#allocation2], %s1182_s23 }
  0x1b   : > { %v590_v1 = vld [vmem:[%s1474_s30 + $0x8] sm:$0xf]  ;;  %v1478_v2 = vld [vmem:[%s1474_s30] sm:$0xff]  ;;  %s1075_s28 = sshll.u32 %s203_s27, 4  ;;  %s1580_s28 = int_to_ptr.vmem [resolvable:$true] %s1075_s28 }
  0x1c   : > { %598 = vrot.lane.b32.xlu0 %v590_v1, %s1383_s4  ;;  %594 = vrot.lane.b32.xlu1 %v1478_v2, %s1383_s4  ;;  %v1483_v3 = vcombine.high %v1478_v2, %v1478_v2  ;;  %v228_v4 = vld [vmem:[%s1474_s30 + $0x8] sm:$0xf] }
  0x1d   : > { %v684_v5 = vld [vmem:[%s1474_s30 + $0x8] sm:$0xf] }
  0x1e   : > { %v778_v6 = vld [vmem:[%s1474_s30 + $0x8] sm:$0xf] }
  0x1f   : > { %v402_v7 = vld [vmem:[%s1474_s30 + $0x8] sm:$0xf] }
  0x20   : > { %596 = vrot.lane.b32.xlu0 %v1483_v3, %s1383_s4  ;;  %234 = vrot.lane.b32.xlu1 %v1483_v3, %s1384_s5  ;;  %v872_v8 = vld [vmem:[%s1474_s30 + $0x8] sm:$0xf] }
  0x21   : > { %v496_v10 = vld [vmem:[%s1474_s30 + $0x8] sm:$0xf] }
  0x22   : > { %v965_v43 = vld [vmem:[%s1474_s30 + $0x4] sm:$0xff] }
  0x23   : > { %v967_v48 = vcombine.high %v965_v43, %v965_v43 }
  0x24   : > { %236 = vrot.lane.b32.xlu0 %v228_v4, %s1384_s5  ;;  %690 = vrot.lane.b32.xlu1 %v1483_v3, %s1385_s6 }
  0x28   : > { %692 = vrot.lane.b32.xlu0 %v684_v5, %s1385_s6  ;;  %232 = vrot.lane.b32.xlu1 %v1478_v2, %s1384_s5  ;;  %s1578_s5 = scalar_lea.hbm %s1628_s3, %s1216_s26 }
  0x2c   : > { %688 = vrot.lane.b32.xlu0 %v1478_v2, %s1385_s6  ;;  %784 = vrot.lane.b32.xlu1 %v1483_v3, %s1386_s7  ;;  %s1059_s6 = scalar_lea.sflag [#allocation3], %s201_s21 }
  0x30   : > { %786 = vrot.lane.b32.xlu0 %v778_v6, %s1386_s7  ;;  %782 = vrot.lane.b32.xlu1 %v1478_v2, %s1386_s7  ;;  %s1302_s7 = scalar_lea.vmem %s1580_s28, 256 }
  0x31   : > { %p1303_p12 = scmp.ne.s32.totalorder %s1580_s28, %s1302_s7 }
  0x33   : > { %p1304_p13 = pnand %p1303_p12, %p1452_p4 }
  0x34   : > { %408 = vrot.lane.b32.xlu0 %v1483_v3, %s1387_s8  ;;  %410 = vrot.lane.b32.xlu1 %v402_v7, %s1387_s8 }
  0x35   : > { %p1305_p0 = pneg %p1304_p13 }
  0x38   : > { %878 = vrot.lane.b32.xlu0 %v1483_v3, %s1388_s9  ;;  %880 = vrot.lane.b32.xlu1 %v872_v8, %s1388_s9 }
  0x3c   : > { %406 = vrot.lane.b32.xlu0 %v1478_v2, %s1387_s8  ;;  %876 = vrot.lane.b32.xlu1 %v1478_v2, %s1388_s9  ;;  %s1306_s8 = sshll.u32 %s1391_s15, 4  ;;  %s1307_s8 = int_to_ptr.vmem [resolvable:$false] %s1306_s8 }
  0x3d   : > { %s1308_s9 = scalar_lea.vmem %s1307_s8, 512  ;;  %p1309_p1 = scmp.lt.s32.totalorder %s1580_s28, %s1307_s8 }
  0x3e   : > { %p1310_p2 = scmp.lt.s32.totalorder %s1308_s9, %s1302_s7 }
  0x40   : > { %502 = vrot.lane.b32.xlu0 %v1483_v3, %s1390_s10  ;;  %504 = vrot.lane.b32.xlu1 %v496_v10, %s1390_s10  ;;  %p1311_p3 = por %p1310_p2, %p1309_p1 }
  0x42   : > { %p1312_p5 = pnand %p1311_p3, %p1305_p0 }
  0x44   : > { %500 = vrot.lane.b32.xlu0 %v1478_v2, %s1390_s10  ;;  %1051 = vperm.xlu1 %1298, %v1048_v11  }
  0x8e   : > { %v599_v12 = vpop.permute.xlu0 %598  ;;  %v595_v13 = vpop.permute.xlu1 %594 }
  0x92   : > { %v597_v14 = vpop.permute.xlu0 %596  ;;  %v235_v15 = vpop.permute.xlu1 %234 }
  0x93   : > { %v602_v16 = vsel %vm600_vm0, %v597_v14, %v599_v12  ;;  %v601_v17 = vsel %vm600_vm0, %v595_v13, %v597_v14 }
  0x94   : > { %1196 = vmatprep.subr.msk.mxu0 %vm245_vm1, %v602_v16 }
  0x95   : > { %1197 = vmatpush1.msk.msra.mxu0 %vm245_vm1, %v601_v17 }
  0x96   : > { %v237_v19 = vpop.permute.xlu0 %236  ;;  %v691_v20 = vpop.permute.xlu1 %690  ;;  %1198 = vmatmul.mubr.msk.f32.vlgmr.msra.gmra.mrb[0].mxu0 %vm241_vm2, %v221_v18 }
  0x97   : > { %v240_v21 = vsel %vm238_vm3, %v235_v15, %v237_v19  ;;  %768 = vmatprep.mubr.f32.mxu0 %v1382_v0 }
  0x98   : > { %1184 = vmatprep.subr.msk.mxu1 %vm245_vm1, %v240_v21 }
  0x9a   : > { %v693_v22 = vpop.permute.xlu0 %692  ;;  %v233_v23 = vpop.permute.xlu1 %232 }
  0x9b   : > { %v696_v25 = vsel %vm694_vm4, %v691_v20, %v693_v22  ;;  %v239_v26 = vsel %vm238_vm3, %v233_v23, %v235_v15 }
  0x9c   : > { %1185 = vmatpush1.msk.msra.mxu1 %vm245_vm1, %v239_v26  ;;  %1199 = vmatprep.subr.msk.mxu0 %vm245_vm1, %v696_v25 }
  0x9d   : > { %1186 = vmatmul.mubr.msk.f32.vlgmr.msra.gmra.mrb[0].mxu1 %vm241_vm2, %v218_v24  ;;  %1187 = vmatprep.subr.msk.mxu1 %vm245_vm1, %v1483_v3 }
  0x9e   : > { %v689_v27 = vpop.permute.xlu0 %688  ;;  %v785_v28 = vpop.permute.xlu1 %784  ;;  %1188 = vmatpush1.msk.msra.mxu1 %vm245_vm1, %v1478_v2  ;;  %394 = vmatprep.mubr.f32.mxu1 %v1382_v0 }
  0x9f   : > { %v695_v30 = vsel %vm694_vm4, %v689_v27, %v691_v20 }
  0xa0   : > { %1200 = vmatpush1.msk.msra.mxu0 %vm245_vm1, %v695_v30 }
  0xa1   : > { %1201 = vmatmul.mubr.msk.f32.vlgmr.msra.gmra.mrb[0].mxu0 %vm241_vm2, %v222_v29 }
  0xa2   : > { %v787_v31 = vpop.permute.xlu0 %786  ;;  %v783_v32 = vpop.permute.xlu1 %782  ;;  %862 = vmatprep.mubr.f32.mxu0 %v1382_v0 }
  0xa3   : > { %v790_v34 = vsel %vm788_vm5, %v785_v28, %v787_v31  ;;  %v789_v35 = vsel %vm788_vm5, %v783_v32, %v785_v28 }
  0xa4   : > { %1202 = vmatprep.subr.msk.mxu0 %vm245_vm1, %v790_v34 }
  0xa5   : > { %1203 = vmatpush1.msk.msra.mxu0 %vm245_vm1, %v789_v35  ;;  %1189 = vmatmul.mubr.msk.f32.vlgmr.msra.gmra.mrb[0].mxu1 %vm241_vm2, %v217_v33 }
  0xa6   : > { %v409_v36 = vpop.permute.xlu0 %408  ;;  %v411_v37 = vpop.permute.xlu1 %410  ;;  %486 = vmatprep.mubr.f32.mxu1 %v1382_v0 }
  0xa7   : > { %v414_v39 = vsel %vm412_vm6, %v409_v36, %v411_v37 }
  0xa8   : > { %1190 = vmatprep.subr.msk.mxu1 %vm245_vm1, %v414_v39 }
  0xa9   : > { %1204 = vmatmul.mubr.msk.f32.vlgmr.msra.gmra.mrb[0].mxu0 %vm241_vm2, %v223_v38 }
  0xaa   : > { %v879_v40 = vpop.permute.xlu0 %878  ;;  %v881_v41 = vpop.permute.xlu1 %880  ;;  %956 = vmatprep.mubr.f32.mxu0 %v1382_v0 }
  0xab   : > { %v884_v42 = vsel %vm882_vm7, %v879_v40, %v881_v41 }
  0xac   : > { %1205 = vmatprep.subr.msk.mxu0 %vm245_vm1, %v884_v42 }
  0xae   : > { %v407_v44 = vpop.permute.xlu0 %406  ;;  %v877_v45 = vpop.permute.xlu1 %876 }
  0xaf   : > { %v413_v49 = vsel %vm412_vm6, %v407_v44, %v409_v36  ;;  %v883_v50 = vsel %vm882_vm7, %v877_v45, %v879_v40 }
  0xb0   : > { %1191 = vmatpush1.msk.msra.mxu1 %vm245_vm1, %v413_v49  ;;  %1206 = vmatpush1.msk.msra.mxu0 %vm245_vm1, %v883_v50 }
  0xb1   : > { %1192 = vmatmul.mubr.msk.f32.vlgmr.msra.gmra.mrb[0].mxu1 %vm241_vm2, %v219_v46  ;;  %1207 = vmatmul.mubr.msk.f32.vlgmr.msra.gmra.mrb[0].mxu0 %vm241_vm2, %v224_v47 }
  0xb2   : > { %v503_v51 = vpop.permute.xlu0 %502  ;;  %v505_v52 = vpop.permute.xlu1 %504  ;;  %1208 = vmatprep.subr.msk.mxu0 %vm245_vm1, %v967_v48  ;;  %580 = vmatprep.mubr.f32.mxu1 %v1382_v0 }
  0xb3   : > { %v508_v53 = vsel %vm506_vm8, %v503_v51, %v505_v52  ;;  %1209 = vmatpush1.msk.msra.mxu0 %vm245_vm1, %v965_v43  ;;  %1039 = vmatprep.mubr.f32.mxu0 %v1382_v0 }
  0xb4   : > { %1193 = vmatprep.subr.msk.mxu1 %vm245_vm1, %v508_v53 }
  0xb6   : > { %v501_v54 = vpop.permute.xlu0 %500 }
  0xb7   : > { %v507_v57 = vsel %vm506_vm8, %v501_v54, %v503_v51 }
  0xb8   : > { %1194 = vmatpush1.msk.msra.mxu1 %vm245_vm1, %v507_v57 }
  0xb9   : > { %1195 = vmatmul.mubr.msk.f32.vlgmr.msra.gmra.mrb[0].mxu1 %vm241_vm2, %v220_v55  ;;  %1210 = vmatmul.mubr.msk.f32.vlgmr.msra.gmra.mrb[0].mxu0 %vm241_vm2, %v225_v56 }
  0xc3   : > { %v1052_v58 = vpop.permute.xlu1 %1051 }
 0x18c   : > { %v582_v59 = vpop.f32.mrb[0].mxu1  ;;  %v1041_v60 = vpop.f32.mrb[0].mxu0 }
 0x18d   : > { %v1217_v61 = vadd.f32 %v1041_v60, %v582_v59  ;;  %v584_v62 = vpop.f32.mrb[1].mxu1  ;;  %v1043_v63 = vpop.f32.mrb[1].mxu0 }
 0x18e   : > { %v1218_v0 = vadd.f32 %v1043_v63, %v584_v62 }
 0x18f   : > { %v1054_v1 = vadd.f32 %v1217_v61, %v1052_v58 }
 0x190   : > { %v1055_v2 = vadd.f32 %v1218_v0, %v1052_v58 }
 0x191   : > { %1056 = vst [vmem:[%s203_s27] sm:$0xff] %v1054_v1 }
 0x192   : > { %1057 = vst [vmem:[%s203_s27 + $0x8] sm:$0xff] %v1055_v2 }
 0x193   : > { %1315 = shalt.err (!%p1312_p5)
}
 0x194   : > { %s1316_s10 = scalar_lea.hbm %s1578_s5, 256  ;;  %s1320_s18 = scalar_lea.hbm %s1628_s3, 512 }
 0x195   : > { %p1317_p6 = scmp.ne.s32.totalorder %s1578_s5, %s1316_s10  ;;  %p1321_p10 = scmp.lt.u32.totalorder %s1578_s5, %s1628_s3 }
 0x196   : > { %p1322_p11 = scmp.lt.u32.totalorder %s1320_s18, %s1316_s10  ;;  %p1324_p13 = scmp.lt.u32.totalorder %s1316_s10, %s1578_s5 }
 0x197   : > { %p1318_p7 = pnand %p1317_p6, %p1452_p4 }
 0x198   : > { %p1323_p12 = por %p1322_p11, %p1321_p10 }
 0x199   : > { %p1319_p9 = pneg %p1318_p7 }
 0x19a   : > { %p1325_p0 = por %p1324_p13, %p1323_p12 }
 0x19c   : > { %p1326_p1 = pnand %p1325_p0, %p1319_p9 }
 0x19e   : > { %1329 = shalt.err (!%p1326_p1)
}
 0x19f   : > { %1234 = dma.vmem_to_hbm [thread:$0]  (%p1452_p4), %s1580_s28, 256, %s1578_s5, %s1059_s6  }
 0x1a0 PF: > { %p1240_p2 = scmp.ge.s32.totalorder %s1380_s17, 2  ;;  %s1087_s23 = sand.u32 1, %s1360_s12  }
 0x1a1   : > { %s1088_s26 = scalar_lea.sflag [#allocation3], %s1087_s23 }
 0x1a2   : > { %p1237_p3 = pnand %p1240_p2, %p1459_p8 }
 0x1a4   : > { %1355 = dma.done.wait (!%p1237_p3), %s1088_s26, 256  }
 0x1a5   : > { %1357 = vsyncadd (!%p1237_p3), %s1088_s26, 4294967040  ;;  %s16_s17 = sadd.s32 1, %s1380_s17   ;;  %s1631_s12 = smov %s1364_s13 }
 0x1a6   : > { %p13_p5 = scmp.ge.s32.totalorder %s16_s17, 4   ;;  %s1632_s13 = smov %s1368_s14 }
 0x1a7   : > { %s1633_s14 = smov %s1465_s25  ;;  %s1634_s15 = smov %s1376_s16 }
 0x1a8   : > { %s1635_s16 = smov %s1637_s20  ;;  %15 = sbr.rel (!%p13_p5) target bundleno = 4 (0x4), region = 73 }
 0x1af   :  { %1093 = vsyncpa [#allocation3], 1 }
 0x1b0   :  { %1095 = vsyncpa [#allocation3 + $0x1], 1 }

</bundles_post_ra>
